<compile_context>
chip_gen: v6e
topology: v6e:2x2x1
jax: 0.10.0
libtpu: 0.0.40
codegen_flags: <defaults>
</compile_context>

<pallas_src>
import functools

import jax
import jax.numpy as jnp
from jax.experimental import pallas as pl
from jax.experimental.pallas import tpu as pltpu

EPSILON = 1e-12


def _ce_loss_kernel(y_ref, logits_ref, loss_ref, *, total_rows, epsilon):
    """One row-tile: p = softmax(logits)[row, label]; loss = -log(p + eps).
    Writes the (block_n, 1) per-row loss column (padded rows -> 0)."""
    step = pl.program_id(0)
    block_n = loss_ref.shape[0]

    logits = logits_ref[...].astype(jnp.float32)                  # (bn, C)
    labels = y_ref[...]                                           # (bn, 1) int32

    # one exp pass over the full block; everything else is per-row (bn, 1)
    m = jnp.max(logits, axis=-1, keepdims=True)                   # (bn, 1)  XLU
    col = jax.lax.broadcasted_iota(jnp.int32, logits.shape, 1)    # (bn, C)  VPU
    e = jnp.exp(logits - m)                                       # (bn, C)  EUP
    # TODO(synk): on v7x with bf16 inputs, do this exp in bf16 (bf16 EUP path)
    # while keeping the row-sum accumulation in f32 to relieve the single EUP.
    rowsum = jnp.sum(e, axis=-1, keepdims=True)                   # (bn, 1)  XLU
    # gather exp(label_logit - m) via one-hot masked reduce -> no second exp and
    # the f32 `logits` slab dies here; only `e` stays live across the reductions.
    p_num = jnp.sum(jnp.where(col == labels, e, 0.0),
                    axis=-1, keepdims=True)                       # (bn, 1)

    # torch-exact: p = softmax(logits)[row, label];  loss = -log(p + eps)
    p = p_num / rowsum                                            # (bn, 1)
    loss_col = -jnp.log(p + epsilon)                              # (bn, 1)

    # zero padded rows (global row index >= N); labels assumed in [0, C)
    row = step * block_n + jax.lax.broadcasted_iota(jnp.int32, loss_col.shape, 0)
    loss_ref[...] = jnp.where(row < total_rows, loss_col, 0.0)


def _vmem_capacity_bytes():
    try:
        return int(pltpu.get_tpu_info().vmem_capacity_bytes)
    except Exception:
        return 64 << 20          # conservative (v7x per-TC) if detection fails


def _choose_block_n(n_rows, n_cols, itemsize, budget_bytes):
    """Largest multiple-of-8 row tile whose working set fits the VMEM budget.
    Per-row working set: double-buffered input + f32 upcast + exp temporaries."""
    per_row = 2 * n_cols * itemsize + 2 * n_cols * 4 + 16
    bn = budget_bytes // max(1, per_row)
    bn = max(8, min(8192, (bn // 8) * 8))
    n_pad8 = ((n_rows + 7) // 8) * 8
    return min(bn, n_pad8)


def cross_entropy_loss(y, y_pred, *, block_n=None, epsilon=EPSILON):
    """y: (N,) int labels in [0, C), y_pred: (N, C) logits (f32 or bf16).
    Returns the scalar f32 mean cross-entropy."""
    N, C = y_pred.shape
    itemsize = jnp.dtype(y_pred.dtype).itemsize

    # generation-aware VMEM budgeting
    vmem_cap = _vmem_capacity_bytes()
    if vmem_cap >= (128 << 20):                # v5e / v6e: 128 MiB physical VMEM
        budget, vmem_cap_limit = 80 << 20, 100 << 20
    else:                                      # v7x: 64 MiB per TC -> leave headroom
        budget, vmem_cap_limit = 36 << 20, 48 << 20

    if block_n is None:
        block_n = _choose_block_n(N, C, itemsize, budget)
    block_n = max(8, (block_n // 8) * 8)
    # TODO(synk): for vocab-scale C where even block_n=8 overflows the VMEM budget,
    # add a C-axis grid dimension with an online (running) max / sum-exp in scratch.

    # pad rows up to a multiple of block_n; padded rows are zeroed in-kernel
    n_pad = ((N + block_n - 1) // block_n) * block_n
    y2d = y.astype(jnp.int32).reshape(N, 1)
    if n_pad != N:
        y_pred = jnp.pad(y_pred, ((0, n_pad - N), (0, 0)))
        y2d = jnp.pad(y2d, ((0, n_pad - N), (0, 0)))
    num_blocks = n_pad // block_n

    kernel = functools.partial(_ce_loss_kernel, total_rows=N, epsilon=epsilon)

    # VMEM: double-buffered logits tile + f32 upcast/exp temps + labels/output cols.
    needed = (2 * block_n * C * itemsize       # double-buffered input tile
              + 2 * block_n * C * 4            # f32 upcast + exp temporaries
              + 4 * block_n * 4                # labels + loss column (x2 buffers)
              + (1 << 20))                     # compiler-scratch slack
    vmem_limit = int(min(vmem_cap_limit, max(needed, 16 << 20)))

    logits_spec = pl.BlockSpec((block_n, C), lambda i: (i, 0))
    if block_n * C * itemsize < (1 << 20) and num_blocks >= 3:
        # sub-MiB tiles with a long grid: 3-deep buffering hides DMA issue latency
        try:
            logits_spec = pl.BlockSpec((block_n, C), lambda i: (i, 0),
                                       pipeline_mode=pl.Buffered(3))
        except TypeError:
            pass  # older jax without pipeline_mode: default double-buffering

    per_row_loss = pl.pallas_call(
        kernel,
        out_shape=jax.ShapeDtypeStruct((n_pad, 1), jnp.float32),
        grid_spec=pltpu.PrefetchScalarGridSpec(
            num_scalar_prefetch=0,
            grid=(num_blocks,),
            in_specs=[
                pl.BlockSpec((block_n, 1), lambda i: (i, 0)),    # labels
                logits_spec,                                     # logits
            ],
            out_specs=pl.BlockSpec((block_n, 1), lambda i: (i, 0)),
        ),
        compiler_params=pltpu.CompilerParams(
            # row tiles are independent -> parallel (2-TC split on v7x, no-op on v5e/v6e)
            dimension_semantics=("parallel",),
            vmem_limit_bytes=vmem_limit,
        ),
    )(y2d, y_pred)

    # final reduction in the wrapper (padded rows contribute exactly 0)
    return jnp.sum(per_row_loss) / jnp.float32(N)


def _reference(y, y_pred, epsilon=EPSILON):
    probs = jax.nn.softmax(y_pred.astype(jnp.float32), axis=1) + epsilon
    onehot = jax.nn.one_hot(y, y_pred.shape[1], dtype=jnp.float32)
    loss = -jnp.sum(onehot * jnp.log(probs), axis=1)
    return jnp.mean(loss)


if __name__ == "__main__":
    key = jax.random.PRNGKey(0)
    k1, k2 = jax.random.split(key)

    N, C = 16, 32  # small demo: batch=16, num_classes=32
    y_pred = jax.random.normal(k1, (N, C), dtype=jnp.float32)
    y = jax.random.randint(k2, (N,), 0, C, dtype=jnp.int32)

    loss = cross_entropy_loss(y, y_pred)
    jax.block_until_ready(loss)

    ref = _reference(y, y_pred)
    assert jnp.allclose(loss, ref, rtol=1e-5, atol=1e-5), (loss, ref)
    print("KERNEL_OK")
</pallas_src>

<mosaic_0001>
module attributes {stable_mosaic.version = 11 : i64} {
  func.func @_ce_loss_kernel(%arg0: i32, %arg1: memref<16x1xi32, #tpu.memory_space<vmem>>, %arg2: memref<16x32xf32, #tpu.memory_space<vmem>>, %arg3: memref<16x1xf32, #tpu.memory_space<vmem>>) attributes {dimension_semantics = [#tpu.dimension_semantics<parallel>], iteration_bounds = array<i64: 1>, scalar_prefetch = 0 : i64, scratch_operands = 0 : i64, tpu.core_type = #tpu.core_type<tc>, window_params = [{transform_indices = @transform_0, window_bounds = array<i64: 16, 1>}, {transform_indices = @transform_1, window_bounds = array<i64: 16, 32>}, {transform_indices = @transform_2, window_bounds = array<i64: 16, 1>}]} {
    %c0 = arith.constant 0 : index
    %c0_0 = arith.constant 0 : index
    %0 = vector.load %arg2[%c0, %c0_0] : memref<16x32xf32, #tpu.memory_space<vmem>>, vector<16x32xf32>
    %c0_1 = arith.constant 0 : index
    %c0_2 = arith.constant 0 : index
    %1 = vector.load %arg1[%c0_1, %c0_2] : memref<16x1xi32, #tpu.memory_space<vmem>>, vector<16x1xi32>
    %cst = arith.constant dense<0xFF800000> : vector<16xf32>
    %2 = vector.multi_reduction <maximumf>, %0, %cst [1] : vector<16x32xf32> to vector<16xf32>
    %3 = vector.shape_cast %2 : vector<16xf32> to vector<16x1xf32>
    %4 = tpu.iota {dimensions = array<i32: 1>} : vector<16x32xi32>
    %5 = vector.broadcast %3 : vector<16x1xf32> to vector<16x32xf32>
    %6 = arith.subf %0, %5 : vector<16x32xf32>
    %7 = math.exp %6 : vector<16x32xf32>
    %cst_3 = arith.constant dense<0.000000e+00> : vector<16xf32>
    %8 = vector.multi_reduction <add>, %7, %cst_3 [1] : vector<16x32xf32> to vector<16xf32>
    %9 = vector.shape_cast %8 : vector<16xf32> to vector<16x1xf32>
    %10 = vector.broadcast %1 : vector<16x1xi32> to vector<16x32xi32>
    %11 = arith.cmpi eq, %4, %10 : vector<16x32xi32>
    %cst_4 = arith.constant 0.000000e+00 : f32
    %12 = vector.broadcast %cst_4 : f32 to vector<16x32xf32>
    %13 = arith.select %11, %7, %12 : vector<16x32xi1>, vector<16x32xf32>
    %cst_5 = arith.constant dense<0.000000e+00> : vector<16xf32>
    %14 = vector.multi_reduction <add>, %13, %cst_5 [1] : vector<16x32xf32> to vector<16xf32>
    %15 = vector.shape_cast %14 : vector<16xf32> to vector<16x1xf32>
    %16 = arith.divf %15, %9 : vector<16x1xf32>
    %cst_6 = arith.constant 9.99999996E-13 : f32
    %17 = vector.broadcast %cst_6 : f32 to vector<16x1xf32>
    %18 = arith.addf %16, %17 : vector<16x1xf32>
    %19 = math.log %18 : vector<16x1xf32>
    %cst_7 = arith.constant 0.000000e+00 : f32
    %20 = vector.broadcast %cst_7 : f32 to vector<16x1xf32>
    %21 = arith.subf %20, %19 : vector<16x1xf32>
    %c16_i32 = arith.constant 16 : i32
    %22 = arith.muli %arg0, %c16_i32 : i32
    %23 = tpu.iota {dimensions = array<i32: 0>} : vector<16x1xi32>
    %24 = vector.broadcast %22 : i32 to vector<16x1xi32>
    %25 = arith.addi %24, %23 : vector<16x1xi32>
    %c16_i32_8 = arith.constant 16 : i32
    %26 = vector.broadcast %c16_i32_8 : i32 to vector<16x1xi32>
    %27 = arith.cmpi slt, %25, %26 : vector<16x1xi32>
    %cst_9 = arith.constant 0.000000e+00 : f32
    %28 = vector.broadcast %cst_9 : f32 to vector<16x1xf32>
    %29 = arith.select %27, %21, %28 : vector<16x1xi1>, vector<16x1xf32>
    %c0_10 = arith.constant 0 : index
    %c0_11 = arith.constant 0 : index
    %30 = vector.load %arg3[%c0_10, %c0_11] : memref<16x1xf32, #tpu.memory_space<vmem>>, vector<16x1xf32>
    tpu.vector_store %arg3[%c0_10, %c0_11], %29 {strides = array<i32>} : memref<16x1xf32, #tpu.memory_space<vmem>>, vector<16x1xf32>,
    return
  }
  func.func @transform_0(%arg0: i32) -> (i32, i32) {
    %c0_i32 = arith.constant 0 : i32
    %c0_i32_0 = arith.constant 0 : i32
    return %arg0, %c0_i32 : i32, i32
  }
  func.func @transform_1(%arg0: i32) -> (i32, i32) {
    %c0_i32 = arith.constant 0 : i32
    %c0_i32_0 = arith.constant 0 : i32
    return %arg0, %c0_i32 : i32, i32
  }
  func.func @transform_2(%arg0: i32) -> (i32, i32) {
    %c0_i32 = arith.constant 0 : i32
    %c0_i32_0 = arith.constant 0 : i32
    return %arg0, %c0_i32 : i32, i32
  }
}

</mosaic_0001>

<bundles_post_ra>
// kernel: tpu_custom_call.1
= control target key start
LH: loop header
LB: loop body
LE: loop exit
PB: predicated region body
PF: predicated region fallthrough
CT: control target
= control target key end

     0   :  { %vm15_vm0 = vcmask 261120   ;;  %v97_v2 = vmov 0   ;;  %v22_v13 = vlaneseq  ;;  %vm75_vm3 = vcmask 7168   ;;  %s137_s1 = inlined_call_operand.vmem [shape: f32[16,32], index: 1, kind: input, shape index: {}]   ;;  %s138_s0 = inlined_call_operand.vmem [shape: s32[16,1], index: 0, kind: input, shape index: {}]   ;;  %s139_s2 = inlined_call_operand.vmem [shape: f32[16,1], index: 2, kind: output, shape index: {}]  }
   0x1   :  { %v11_v0 = vld [vmem:[%s137_s1] sm:$0xff]  ;;  %v12_v1 = vld [vmem:[%s137_s1 + $0x8] sm:$0xff]  ;;  %83 = vset.pattern.permute.xlu1 %v97_v2  ;;  %84 = vset.pattern.permute.xlu0 %v97_v2 }
   0x2   :  { %v13_v3 = vld [vmem:[%s138_s0] sm:$0xff]  ;;  %v16_v4 = vsel %vm15_vm0, %v11_v0, -inf  ;;  %v14_v5 = vld [vmem:[%s138_s0 + $0x8] sm:$0xff]  ;;  %v19_v6 = vsel %vm15_vm0, %v12_v1, -inf  ;;  %v23_v15 = vand.u32 127, %v22_v13 }
   0x3   :  { %37 = vperm.xlu1 %83, %v13_v3   ;;  %17 = vmax.xlane.f32.xlu0 %v16_v4 }
   0x7   :  { %40 = vperm.xlu1 %83, %v14_v5   ;;  %20 = vmax.xlane.f32.xlu0 %v19_v6 }
  0x7e   :  { %v38_v14 = vpop.permute.xlu1 %37 }
  0x7f   :  { %vm42_vm1 = vcmp.eq.s32.totalorder %v23_v15, %v38_v14 }
  0x82   :  { %v41_v17 = vpop.permute.xlu1 %40 }
  0x83   :  { %vm43_vm2 = vcmp.eq.s32.totalorder %v23_v15, %v41_v17 }
  0x8c   :  { %v18_v7 = vpop.xlane.xlu0 %17 }
  0x8d   :  { %v24_v8 = vsub.f32 %v11_v0, %v18_v7 }
  0x8f   :  { %v26_v9 = vmul.f32 1.442695, %v24_v8 }
  0x90   :  { %v21_v10 = vpop.xlane.xlu0 %20 }
  0x91   :  { %85 = vpow2.f32 %v26_v9  ;;  %v25_v11 = vsub.f32 %v12_v1, %v21_v10 }
  0x93   :  { %v28_v12 = vmul.f32 1.442695, %v25_v11 }
  0x95   :  { %87 = vpow2.f32 %v28_v12 }
  0x9e   :  { %v86_v16 = vpop.eup %85 }
  0x9f   :  { %v30_v18 = vsel %vm15_vm0, %v86_v16, 0.0  ;;  %v44_v19 = vsel %vm42_vm1, %v86_v16, 0.0 }
  0xa0   :  { %31 = vadd.xlane.f32.xlu0 %v30_v18  ;;  %v46_v22 = vsel %vm15_vm0, %v44_v19, 0.0 }
  0xa2   :  { %v88_v20 = vpop.eup %87 }
  0xa3   :  { %v33_v21 = vsel %vm15_vm0, %v88_v20, 0.0  ;;  %v45_v23 = vsel %vm43_vm2, %v88_v20, 0.0 }
  0xa4   :  { %34 = vadd.xlane.f32.xlu1 %v33_v21  ;;  %47 = vadd.xlane.f32.xlu0 %v46_v22  ;;  %v49_v24 = vsel %vm15_vm0, %v45_v23, 0.0 }
  0xa8   :  { %50 = vadd.xlane.f32.xlu0 %v49_v24 }
 0x129   :  { %v32_v25 = vpop.xlane.xlu0 %31 }
 0x12a   :  { %89 = vrcp.f32 %v32_v25 }
 0x12d   :  { %v35_v26 = vpop.xlane.xlu1 %34  ;;  %v48_v27 = vpop.xlane.xlu0 %47 }
 0x12e   :  { %91 = vrcp.f32 %v35_v26 }
 0x131   :  { %v51_v32 = vpop.xlane.xlu0 %50 }
 0x137   :  { %v90_v28 = vpop.eup %89 }
 0x138   :  { %v53_v29 = vmul.f32 %v90_v28, %v48_v27 }
 0x13a   :  { %v56_v30 = vadd.f32 1e-12, %v53_v29 }
 0x13b   :  { %v92_v31 = vpop.eup %91 }
 0x13c   :  { %93 = vlog2.f32 %v56_v30  ;;  %v55_v33 = vmul.f32 %v92_v31, %v51_v32 }
 0x13e   :  { %v57_v34 = vadd.f32 1e-12, %v55_v33 }
 0x140   :  { %95 = vlog2.f32 %v57_v34 }
 0x149   :  { %v94_v35 = vpop.eup %93 }
 0x14a   :  { %v59_v36 = vmul.f32 0.6931472, %v94_v35 }
 0x14c   :  { %v62_v37 = vsub.f32 0.0, %v59_v36 }
 0x14d   :  { %v96_v38 = vpop.eup %95 }
 0x14e   :  { %76 = vst.msk [vmem:[%s139_s2] sm:$0xff] %vm75_vm3, %v62_v37  ;;  %v61_v39 = vmul.f32 0.6931472, %v96_v38 }
 0x150   :  { %v63_v40 = vsub.f32 0.0, %v61_v39 }
 0x152   :  { %77 = vst.msk [vmem:[%s139_s2 + $0x8] sm:$0xff] %vm75_vm3, %v63_v40 }

</bundles_post_ra>
